<compile_context>
chip_gen: v7x
topology: tpu7x:2x2x1
jax: 0.10.0
libtpu: 0.0.40
codegen_flags: <defaults>
</compile_context>

<pallas_src>
import math
import functools

import jax
import jax.numpy as jnp
from jax.experimental import pallas as pl
from jax.experimental.pallas import tpu as pltpu

_MIB = 1024 * 1024


def _round_up(x: int, m: int) -> int:
    return (x + m - 1) // m * m


def _mlp_kernel(x_ref, w1_ref, b1_ref, w2_ref, b2_ref, o_ref, acc_ref,
                *, mxu_dtype, gelu_dtype):
    # x_ref : (tm, n_embd)   token tile (resident across the hidden axis)
    # w1_ref: (n_embd, th)   hidden-chunk of c_fc weight (full H when resident)
    # b1_ref: (1, th)        hidden-chunk of c_fc bias
    # w2_ref: (th, n_embd)   hidden-chunk of c_proj weight
    # b2_ref: (1, n_embd)    c_proj bias (constant index map)
    # o_ref : (tm, n_embd)   output tile
    # acc_ref: (tm, n_embd)  f32 VMEM accumulator scratch
    h_idx = pl.program_id(1)

    @pl.when(h_idx == 0)
    def _init():
        acc_ref[...] = jnp.zeros_like(acc_ref)

    x = x_ref[...].astype(mxu_dtype)
    w1 = w1_ref[...].astype(mxu_dtype)

    # c_fc chunk: (tm, th), f32 accumulation on the MXU; row-vector bias.
    h = jnp.dot(x, w1, preferred_element_type=jnp.float32)
    h = h + b1_ref[...].astype(jnp.float32)

    # GELU (tanh approximation, matches torch.nn.GELU(approximate='tanh')):
    #   0.5*h*(1 + tanh(c*(h + 0.044715*h^3)))  ==  h * sigmoid(2*c*(h + ...))
    # Computed in `gelu_dtype` (bf16 on the fast path, f32 on the exact path).
    hg = h.astype(gelu_dtype)
    c = math.sqrt(2.0 / math.pi)
    z = (2.0 * c) * (hg + 0.044715 * (hg * hg * hg))
    gate = 1.0 / (1.0 + jnp.exp(-z))          # sigmoid via exp + divide (EUP)
    g = hg * gate

    # Partial c_proj: accumulate g_chunk @ W2_chunk into the f32 accumulator.
    w2 = w2_ref[...].astype(mxu_dtype)
    acc_ref[...] += jnp.dot(g.astype(mxu_dtype), w2,
                            preferred_element_type=jnp.float32)

    @pl.when(h_idx == pl.num_programs(1) - 1)
    def _finalize():
        out = acc_ref[...] + b2_ref[...].astype(jnp.float32)
        o_ref[...] = out.astype(o_ref.dtype)


@functools.partial(jax.jit, static_argnames=("tm_max", "mxu_bf16", "th_override"))
def mlp_pallas(x2d, w1, b1, w2, b2, *, tm_max=256, mxu_bf16=True, th_override=None):
    """x2d: (M, n_embd); w1: (n_embd, 4*n_embd); w2: (4*n_embd, n_embd)."""
    M, E = x2d.shape
    H = w1.shape[1]
    a_bytes = x2d.dtype.itemsize
    w_bytes = w1.dtype.itemsize

    # MXU operand dtype. v7x MXU has no f32 path and f32 weights double HBM
    # traffic, so production paths cast operands to bf16 (f32 accumulation).
    in_dtype = jnp.promote_types(x2d.dtype, w1.dtype)
    mxu_dtype = jnp.bfloat16 if mxu_bf16 else in_dtype
    gelu_dtype = jnp.bfloat16 if jnp.dtype(mxu_dtype) == jnp.dtype(jnp.bfloat16) \
        else jnp.float32

    # Generation-aware VMEM budget (64 MiB/TC on v7x, 128 MiB on v5e/v6e).
    try:
        vmem_cap = int(pltpu.get_tpu_info().vmem_capacity_bytes)
    except Exception:
        vmem_cap = 64 * _MIB
    vmem_limit = int(min(vmem_cap - 12 * _MIB, 0.85 * vmem_cap))
    budget = int(0.9 * vmem_limit)

    # Token tile: large, 8-aligned, but at least 2 "parallel" grid steps when M
    # allows (v7x megacore).  Ragged M handled by a cdiv grid (no HBM padding).
    def pick_tm(tm_cap):
        min_tiles = 2 if M >= 16 else 1
        n_tiles = max(min_tiles, pl.cdiv(M, tm_cap))
        return max(8, min(tm_cap, _round_up(pl.cdiv(M, n_tiles), 8)))

    tm = pick_tm(tm_max)

    def vmem_est(tm_, th_, wbuf):
        return (wbuf * (2 * E * th_ + th_ + E) * w_bytes   # W1/W2 (+b1/b2) buffers
                + 4 * tm_ * E * a_bytes                    # x + out double buffers
                + tm_ * E * 4                              # f32 accumulator scratch
                + 2 * tm_ * th_ * 4)                       # h / g temporaries

    resident = (th_override is None) and (vmem_est(tm, H, 1) <= budget)

    if resident:
        th, wbuf = H, 1
    else:
        wbuf = 2
        if th_override is None and vmem_cap >= 96 * _MIB:
            # 128 MiB parts (v5e/v6e): bigger token tile when weights are
            # re-streamed, to raise FLOP/weight-byte intensity.
            tm = pick_tm(max(tm_max, 512))
        if th_override is not None:
            th = int(th_override)
            if H % th:
                raise ValueError(f"th_override={th} must divide hidden={H}")
        else:
            th = H
            for cand in (2048, 1536, 1024, 768, 512):   # keep chunks >= 512 lanes
                if H % cand == 0 and cand < H:
                    th = cand
                    break
        # Guard (correctness note): shrink the token tile if the chosen
        # chunking still does not fit the VMEM budget.
        while vmem_est(tm, th, wbuf) > budget and tm > 8:
            tm = max(8, _round_up(tm // 2, 8))
        if vmem_est(tm, th, wbuf) > vmem_limit:
            raise ValueError("MLP tiling does not fit in VMEM; reduce tile sizes")

    grid_m = pl.cdiv(M, tm)
    num_h = H // th
    grid = (grid_m, num_h)

    x_spec = pl.BlockSpec((tm, E), lambda i, h: (i, 0))
    o_spec = pl.BlockSpec((tm, E), lambda i, h: (i, 0))

    if resident:
        # Constant index maps + single buffering: weights are DMA'd once and
        # stay VMEM-resident for every token tile.
        w1_spec = pl.BlockSpec((E, H), lambda i, h: (0, 0), pipeline_mode=pl.Buffered(1))
        b1_spec = pl.BlockSpec((1, H), lambda i, h: (0, 0), pipeline_mode=pl.Buffered(1))
        w2_spec = pl.BlockSpec((H, E), lambda i, h: (0, 0), pipeline_mode=pl.Buffered(1))
        b2_spec = pl.BlockSpec((1, E), lambda i, h: (0, 0), pipeline_mode=pl.Buffered(1))
    else:
        nh = num_h

        def h_map(i, h):
            # Serpentine: even token tiles walk h = 0..nh-1, odd tiles walk
            # nh-1..0, so the chunk already resident at an i -> i+1 boundary is
            # reused without a re-DMA.
            return h + (i % 2) * (nh - 1 - 2 * h)

        w1_spec = pl.BlockSpec((E, th), lambda i, h: (0, h_map(i, h)))
        b1_spec = pl.BlockSpec((1, th), lambda i, h: (0, h_map(i, h)))
        w2_spec = pl.BlockSpec((th, E), lambda i, h: (h_map(i, h), 0))
        b2_spec = pl.BlockSpec((1, E), lambda i, h: (0, 0))

    kernel = functools.partial(_mlp_kernel, mxu_dtype=mxu_dtype, gelu_dtype=gelu_dtype)

    return pl.pallas_call(
        kernel,
        out_shape=jax.ShapeDtypeStruct((M, E), x2d.dtype),
        grid_spec=pltpu.PrefetchScalarGridSpec(
            num_scalar_prefetch=0,
            grid=grid,
            in_specs=[x_spec, w1_spec, b1_spec, w2_spec, b2_spec],
            out_specs=o_spec,
            scratch_shapes=[pltpu.VMEM((tm, E), jnp.float32)],
        ),
        compiler_params=pltpu.CompilerParams(
            dimension_semantics=("parallel", "arbitrary"),
            vmem_limit_bytes=int(vmem_limit),
        ),
    )(x2d, w1, b1, w2, b2)


def mlp_forward(x, params, *, tm_max=256, mxu_bf16=True, th_override=None):
    """x: (batch, seq, n_embd) -> (batch, seq, n_embd)."""
    B, S, E = x.shape
    y2d = mlp_pallas(x.reshape(B * S, E), params["w1"], params["b1"],
                     params["w2"], params["b2"],
                     tm_max=tm_max, mxu_bf16=mxu_bf16, th_override=th_override)
    return y2d.reshape(B, S, E)


# ----------------------------- pure-JAX reference -----------------------------

def gelu_tanh_ref(x):
    c = math.sqrt(2.0 / math.pi)
    return 0.5 * x * (1.0 + jnp.tanh(c * (x + 0.044715 * x ** 3)))


def mlp_ref(x, params):
    h = x @ params["w1"] + params["b1"][0]
    g = gelu_tanh_ref(h)
    return g @ params["w2"] + params["b2"][0]


def _make_params(key, n_embd, hidden, dtype=jnp.float32):
    kw1, kb1, kw2, kb2 = jax.random.split(key, 4)
    return {
        "w1": jax.random.normal(kw1, (n_embd, hidden), dtype) / math.sqrt(n_embd),
        "b1": jax.random.normal(kb1, (1, hidden), dtype) * 0.01,
        "w2": jax.random.normal(kw2, (hidden, n_embd), dtype) / math.sqrt(hidden),
        "b2": jax.random.normal(kb2, (1, n_embd), dtype) * 0.01,
    }


if __name__ == "__main__":
    # Small config consistent with the module: n_embd=32, hidden=4*n_embd=128.
    batch, seq, n_embd = 2, 8, 32
    hidden = 4 * n_embd

    key = jax.random.PRNGKey(0)
    kx, kp, kx2, kp2 = jax.random.split(key, 4)

    x = jax.random.normal(kx, (batch, seq, n_embd), dtype=jnp.float32)
    params = _make_params(kp, n_embd, hidden, jnp.float32)
    y_ref = mlp_ref(x, params)

    # 1) Exact f32 path (MXU operands stay f32, resident weights) — tight check.
    y = mlp_forward(x, params, mxu_bf16=False)
    jax.block_until_ready(y)
    assert y.shape == (batch, seq, n_embd)
    assert jnp.allclose(y, y_ref, atol=1e-4, rtol=1e-4), "f32-exact path mismatch"

    # 2) Production path: bf16 MXU operands / bf16 GELU with f32 params (v7x rec).
    y_fast = mlp_forward(x, params, mxu_bf16=True)
    jax.block_until_ready(y_fast)
    err = float(jnp.max(jnp.abs(y_fast - y_ref)))
    assert err < 0.1, f"bf16-MXU path mismatch vs reference (max abs err {err})"

    # 3) Fully bf16 params/activations.
    x_bf = x.astype(jnp.bfloat16)
    params_bf = {k: v.astype(jnp.bfloat16) for k, v in params.items()}
    y_bf = mlp_forward(x_bf, params_bf)
    jax.block_until_ready(y_bf)
    y_bf_ref = mlp_ref(x_bf.astype(jnp.float32),
                       {k: v.astype(jnp.float32) for k, v in params_bf.items()})
    err_bf = float(jnp.max(jnp.abs(y_bf.astype(jnp.float32) - y_bf_ref)))
    assert err_bf < 0.1, f"bf16 path mismatch vs reference (max abs err {err_bf})"

    # 4) Exercise the chunked + serpentine hidden-streaming path (forced) at a
    #    shape where chunking is tiling-legal: n_embd=64, hidden=256, th=128.
    n_embd2, hidden2 = 64, 256
    x2 = jax.random.normal(kx2, (batch, seq, n_embd2), dtype=jnp.float32)
    params2 = _make_params(kp2, n_embd2, hidden2, jnp.float32)
    y2 = mlp_forward(x2, params2, mxu_bf16=False, th_override=128)
    jax.block_until_ready(y2)
    y2_ref = mlp_ref(x2, params2)
    assert jnp.allclose(y2, y2_ref, atol=1e-4, rtol=1e-4), "chunked path mismatch"

    print("KERNEL_OK")
</pallas_src>

<mosaic_0001>
module attributes {stable_mosaic.version = 11 : i64} {
  func.func @_mlp_kernel(%arg0: i32, %arg1: i32, %arg2: memref<8x32xf32, #tpu.memory_space<vmem>>, %arg3: memref<32x128xf32, #tpu.memory_space<vmem>>, %arg4: memref<1x128xf32, #tpu.memory_space<vmem>>, %arg5: memref<128x32xf32, #tpu.memory_space<vmem>>, %arg6: memref<1x32xf32, #tpu.memory_space<vmem>>, %arg7: memref<8x32xf32, #tpu.memory_space<vmem>>, %arg8: memref<8x32xf32, #tpu.memory_space<vmem>>) attributes {dimension_semantics = [#tpu.dimension_semantics<parallel>, #tpu.dimension_semantics<arbitrary>], iteration_bounds = array<i64: 2, 1>, scalar_prefetch = 0 : i64, scratch_operands = 1 : i64, tpu.core_type = #tpu.core_type<tc>, window_params = [{transform_indices = @transform_0, window_bounds = array<i64: 8, 32>}, {pipeline_mode = #tpu.pipeline_mode<synchronous>, transform_indices = @transform_1, window_bounds = array<i64: 32, 128>}, {pipeline_mode = #tpu.pipeline_mode<synchronous>, transform_indices = @transform_2, window_bounds = array<i64: 1, 128>}, {pipeline_mode = #tpu.pipeline_mode<synchronous>, transform_indices = @transform_3, window_bounds = array<i64: 128, 32>}, {pipeline_mode = #tpu.pipeline_mode<synchronous>, transform_indices = @transform_4, window_bounds = array<i64: 1, 32>}, {transform_indices = @transform_5, window_bounds = array<i64: 8, 32>}]} {
    %c0_i32 = arith.constant 0 : i32
    %0 = arith.cmpi eq, %arg1, %c0_i32 : i32
    %1 = arith.extui %0 : i1 to i32
    %c0_i32_0 = arith.constant 0 : i32
    %2 = arith.cmpi ne, %1, %c0_i32_0 : i32
    scf.if %2 {
      %cst_20 = arith.constant 0.000000e+00 : f32
      %32 = vector.broadcast %cst_20 : f32 to vector<8x32xf32>
      %c0_21 = arith.constant 0 : index
      %c0_22 = arith.constant 0 : index
      %33 = vector.load %arg8[%c0_21, %c0_22] : memref<8x32xf32, #tpu.memory_space<vmem>>, vector<8x32xf32>
      tpu.vector_store %arg8[%c0_21, %c0_22], %32 {strides = array<i32>} : memref<8x32xf32, #tpu.memory_space<vmem>>, vector<8x32xf32>,
    } else {
    }
    %c0 = arith.constant 0 : index
    %c0_1 = arith.constant 0 : index
    %3 = vector.load %arg2[%c0, %c0_1] : memref<8x32xf32, #tpu.memory_space<vmem>>, vector<8x32xf32>
    %c0_2 = arith.constant 0 : index
    %c0_3 = arith.constant 0 : index
    %4 = vector.load %arg3[%c0_2, %c0_3] : memref<32x128xf32, #tpu.memory_space<vmem>>, vector<32x128xf32>
    %cst = arith.constant dense<0.000000e+00> : vector<8x128xf32>
    %5 = tpu.matmul %3, %4, %cst {dimension_numbers = #tpu.dot_dimension_numbers<[1], [0], [0], [1], [0, 0, 1, 1], [], []>} : vector<8x32xf32>, vector<32x128xf32>, vector<8x128xf32> -> vector<8x128xf32>
    %c0_4 = arith.constant 0 : index
    %c0_5 = arith.constant 0 : index
    %6 = vector.load %arg4[%c0_4, %c0_5] : memref<1x128xf32, #tpu.memory_space<vmem>>, vector<1x128xf32>
    %7 = vector.broadcast %6 : vector<1x128xf32> to vector<8x128xf32>
    %8 = arith.addf %5, %7 : vector<8x128xf32>
    %9 = arith.mulf %8, %8 : vector<8x128xf32>
    %10 = arith.mulf %9, %8 : vector<8x128xf32>
    %cst_6 = arith.constant 4.471500e-02 : f32
    %11 = vector.broadcast %cst_6 : f32 to vector<8x128xf32>
    %12 = arith.mulf %11, %10 : vector<8x128xf32>
    %13 = arith.addf %8, %12 : vector<8x128xf32>
    %cst_7 = arith.constant 1.59576917 : f32
    %14 = vector.broadcast %cst_7 : f32 to vector<8x128xf32>
    %15 = arith.mulf %14, %13 : vector<8x128xf32>
    %cst_8 = arith.constant 0.000000e+00 : f32
    %16 = vector.broadcast %cst_8 : f32 to vector<8x128xf32>
    %17 = arith.subf %16, %15 : vector<8x128xf32>
    %18 = math.exp %17 : vector<8x128xf32>
    %cst_9 = arith.constant 1.000000e+00 : f32
    %19 = vector.broadcast %cst_9 : f32 to vector<8x128xf32>
    %20 = arith.addf %19, %18 : vector<8x128xf32>
    %cst_10 = arith.constant 1.000000e+00 : f32
    %21 = vector.broadcast %cst_10 : f32 to vector<8x128xf32>
    %22 = arith.divf %21, %20 : vector<8x128xf32>
    %23 = arith.mulf %8, %22 : vector<8x128xf32>
    %c0_11 = arith.constant 0 : index
    %c0_12 = arith.constant 0 : index
    %24 = vector.load %arg5[%c0_11, %c0_12] : memref<128x32xf32, #tpu.memory_space<vmem>>, vector<128x32xf32>
    %c0_13 = arith.constant 0 : index
    %c0_14 = arith.constant 0 : index
    %25 = vector.load %arg8[%c0_13, %c0_14] : memref<8x32xf32, #tpu.memory_space<vmem>>, vector<8x32xf32>
    %cst_15 = arith.constant dense<0.000000e+00> : vector<8x32xf32>
    %26 = tpu.matmul %23, %24, %cst_15 {dimension_numbers = #tpu.dot_dimension_numbers<[1], [0], [0], [1], [0, 0, 1, 1], [], []>} : vector<8x128xf32>, vector<128x32xf32>, vector<8x32xf32> -> vector<8x32xf32>
    %27 = arith.addf %25, %26 : vector<8x32xf32>
    %c0_16 = arith.constant 0 : index
    %c0_17 = arith.constant 0 : index
    %28 = vector.load %arg8[%c0_16, %c0_17] : memref<8x32xf32, #tpu.memory_space<vmem>>, vector<8x32xf32>
    tpu.vector_store %arg8[%c0_16, %c0_17], %27 {strides = array<i32>} : memref<8x32xf32, #tpu.memory_space<vmem>>, vector<8x32xf32>,
    %c0_i32_18 = arith.constant 0 : i32
    %29 = arith.cmpi eq, %arg1, %c0_i32_18 : i32
    %30 = arith.extui %29 : i1 to i32
    %c0_i32_19 = arith.constant 0 : i32
    %31 = arith.cmpi ne, %30, %c0_i32_19 : i32
    scf.if %31 {
      %c0_20 = arith.constant 0 : index
      %c0_21 = arith.constant 0 : index
      %32 = vector.load %arg8[%c0_20, %c0_21] : memref<8x32xf32, #tpu.memory_space<vmem>>, vector<8x32xf32>
      %c0_22 = arith.constant 0 : index
      %c0_23 = arith.constant 0 : index
      %33 = vector.load %arg6[%c0_22, %c0_23] : memref<1x32xf32, #tpu.memory_space<vmem>>, vector<1x32xf32>
      %34 = vector.broadcast %33 : vector<1x32xf32> to vector<8x32xf32>
      %35 = arith.addf %32, %34 : vector<8x32xf32>
      %c0_24 = arith.constant 0 : index
      %c0_25 = arith.constant 0 : index
      %36 = vector.load %arg7[%c0_24, %c0_25] : memref<8x32xf32, #tpu.memory_space<vmem>>, vector<8x32xf32>
      tpu.vector_store %arg7[%c0_24, %c0_25], %35 {strides = array<i32>} : memref<8x32xf32, #tpu.memory_space<vmem>>, vector<8x32xf32>,
    } else {
    }
    return
  }
  func.func @transform_0(%arg0: i32, %arg1: i32) -> (i32, i32) {
    %c0_i32 = arith.constant 0 : i32
    %c0_i32_0 = arith.constant 0 : i32
    return %arg0, %c0_i32 : i32, i32
  }
  func.func @transform_1(%arg0: i32, %arg1: i32) -> (i32, i32) {
    %c0_i32 = arith.constant 0 : i32
    %c0_i32_0 = arith.constant 0 : i32
    %c0_i32_1 = arith.constant 0 : i32
    return %c0_i32, %c0_i32_0 : i32, i32
  }
  func.func @transform_2(%arg0: i32, %arg1: i32) -> (i32, i32) {
    %c0_i32 = arith.constant 0 : i32
    %c0_i32_0 = arith.constant 0 : i32
    %c0_i32_1 = arith.constant 0 : i32
    return %c0_i32, %c0_i32_0 : i32, i32
  }
  func.func @transform_3(%arg0: i32, %arg1: i32) -> (i32, i32) {
    %c0_i32 = arith.constant 0 : i32
    %c0_i32_0 = arith.constant 0 : i32
    %c0_i32_1 = arith.constant 0 : i32
    return %c0_i32, %c0_i32_0 : i32, i32
  }
  func.func @transform_4(%arg0: i32, %arg1: i32) -> (i32, i32) {
    %c0_i32 = arith.constant 0 : i32
    %c0_i32_0 = arith.constant 0 : i32
    %c0_i32_1 = arith.constant 0 : i32
    return %c0_i32, %c0_i32_0 : i32, i32
  }
  func.func @transform_5(%arg0: i32, %arg1: i32) -> (i32, i32) {
    %c0_i32 = arith.constant 0 : i32
    %c0_i32_0 = arith.constant 0 : i32
    return %arg0, %c0_i32 : i32, i32
  }
}

</mosaic_0001>

<bundles_post_ra>
// kernel: mlp_pallas.1
= control target key start
LH: loop header
LB: loop body
LE: loop exit
PB: predicated region body
PF: predicated region fallthrough
CT: control target
= control target key end

     0   :  { %10 = vsyncpa [#allocation4], 0  ;;  %s989_s0 = inlined_call_operand.vmem [shape: f32[16,32], index: 0, kind: input, shape index: {}]   ;;  %s990_s1 = inlined_call_operand.vmem [shape: f32[32,128], index: 1, kind: input, shape index: {}]   ;;  %s991_s2 = inlined_call_operand.vmem [shape: f32[1,128], index: 2, kind: input, shape index: {}]   ;;  %s992_s3 = inlined_call_operand.vmem [shape: f32[128,32], index: 3, kind: input, shape index: {}]   ;;  %s993_s4 = inlined_call_operand.vmem [shape: f32[1,32], index: 4, kind: input, shape index: {}]   ;;  %s994_s5 = inlined_call_operand.hbm [shape: f32[16,32], index: 5, kind: output, shape index: {}]  }
   0x1   :  { %12 = vsyncpa [#allocation4 + $0x1], 0  ;;  %s807_s18 = smov 0   ;;  %s809_s19 = smov 0  }
   0x2   :  { %s811_s20 = smov 0   ;;  %s813_s21 = smov 0  }
   0x3   :  { %s815_s22 = smov 0   ;;  %s817_s23 = smov 0  }
   0x4 LB: > { %s519_s24 = sadd.s32 4294967295, %s771_s23   ;;  %s520_s25 = sadd.s32 4294967294, %s771_s23   ;;  %s771_s23 = sphi %s817_s23, %s18_s23   ;;  %s767_s22 = sphi %s815_s22, %s1001_s22   ;;  %s763_s21 = sphi %s813_s21, %s1000_s21   ;;  %s759_s20 = sphi %s811_s20, %s999_s20   ;;  %s755_s19 = sphi %s809_s19, %s998_s19   ;;  %s751_s18 = sphi %s807_s18, %s997_s18  }
   0x5   : > { %s30_s26 = sadd.s32 1, %s767_s22  ;;  %s147_s27 = sadd.s32 1, %s759_s20 }
   0x6   : > { %p32_p0 = scmp.ge.s32.totalorder %s30_s26, 2  ;;  %p157_p1 = scmp.ne.s32.totalorder %s759_s20, %s755_s19 }
   0x7   : > { %p158_p2 = scmp.eq.s32.totalorder %s519_s24, 1  ;;  %p163_p3 = scmp.ne.s32.totalorder %s755_s19, %s751_s18 }
   0x8   : > { %s1003_s26 = smov (%p32_p0, %s30_s26), 0  ;;  %p164_p5 = scmp.eq.s32.totalorder %s520_s25, 1 }
   0x9   : > { %p847_p4 = por %p158_p2, %p157_p1  ;;  %s144_s29 = ssub.s32 %s767_s22, %s1003_s26 }
   0xa   : > { %p523_p6 = scmp.ge.s32.totalorder %s771_s23, 1  ;;  %p145_p7 = scmp.eq.s32.totalorder %s144_s29, 0 }
   0xb   : > { %p854_p8 = por %p164_p5, %p163_p3  ;;  %p201_p9 = scmp.lt.s32.totalorder %s771_s23, 3 }
   0xc   : > { %s860_s6 = scalar_select %p145_p7, %s759_s20, %s147_s27  }
   0xd   : > { %p202_p10 = pnand %p523_p6, %p201_p9 }
   0xe   : > { %v239_v0 = vld [vmem:[%s990_s1] sm:$0xff] (!%p202_p10)  ;;  %v240_v1 = vld [vmem:[%s990_s1 + $0x8] sm:$0xff] (!%p202_p10)  ;;  %v241_v2 = vld [vmem:[%s990_s1 + $0x10] sm:$0xff] (!%p202_p10)  ;;  %v773_v3 = vmov (!%p202_p10), 0.0|0.0   ;;  %vm774_vm0 = vmmov (!%p202_p10), 0   ;;  %v775_v6 = vmov (!%p202_p10), 0.0  }
   0xf   : > { %205 = sbr.rel (%p202_p10) target bundleno = 519 (0x207), region = 40  ;;  %601 = vmatprep.subr.bf16.mxu0 (!%p202_p10), %v773_v3  ;;  %v602_v4 = vpack.c.bf16 (!%p202_p10), %v240_v1, %v239_v0  ;;  %v242_v5 = vld [vmem:[%s990_s1 + $0x18] sm:$0xff] (!%p202_p10)  ;;  %563 = vmatprep.mubr.msk.f32.mxu0 (!%p202_p10), %vm774_vm0, %v775_v6  ;;  %p228_p11 = scmp.lt.s32.totalorder (!%p202_p10), %s763_s21, 1  ;;  %vm236_vm1 = vcmask (!%p202_p10), 261120   ;;  %v336_v9 = vld [vmem:[%s992_s3] sm:$0xff] (!%p202_p10)  ;;  %v337_v10 = vld [vmem:[%s992_s3 + $0x8] sm:$0xff] (!%p202_p10) }
  0x10   : > { %237 = vst.msk [vmem:[#allocation2] sm:$0xff] (!%p202_p10), %vm236_vm1, %v775_v6  ;;  %607 = vmatprep.subr.bf16.mxu1 (!%p202_p10), %v773_v3  ;;  %598 = vmatprep.mubr.msk.f32.mxu1 (!%p202_p10), %vm774_vm0, %v775_v6  ;;  %v605_v7 = vpack.c.bf16 (!%p202_p10), %v242_v5, %v241_v2  ;;  %v608_v11 = vpack.c.bf16 (!%p202_p10), %v337_v10, %v336_v9  ;;  %v338_v12 = vld [vmem:[%s992_s3 + $0x10] sm:$0xff] (!%p202_p10)  ;;  %v339_v13 = vld [vmem:[%s992_s3 + $0x18] sm:$0xff] (!%p202_p10)  ;;  %v340_v15 = vld [vmem:[%s992_s3 + $0x20] sm:$0xff] (!%p202_p10)  ;;  %s225_s9 = sand.u32 (!%p202_p10), 1, %s755_s19   ;;  %s530_s13 = sshll.u32 (!%p202_p10), %s763_s21, 7 }
  0x11   : > { %603 = vmatpush3.bf16.msra.mxu0 (!%p202_p10), %v602_v4  ;;  %v611_v14 = vpack.c.bf16 (!%p202_p10), %v339_v13, %v338_v12  ;;  %v341_v16 = vld [vmem:[%s992_s3 + $0x28] sm:$0xff] (!%p202_p10)  ;;  %v342_v18 = vld [vmem:[%s992_s3 + $0x30] sm:$0xff] (!%p202_p10)  ;;  %v343_v19 = vld [vmem:[%s992_s3 + $0x38] sm:$0xff] (!%p202_p10)  ;;  %s524_s10 = sshll.u32 (!%p202_p10), %s225_s9, 3  ;;  %s941_s24 = scalar_lea.hbm (!%p202_p10), %s994_s5, %s530_s13 }
  0x12   : > { %604 = vmatprep.subr.bf16.mxu0 (!%p202_p10), %v773_v3  ;;  %609 = vmatpush3.bf16.msra.mxu1 (!%p202_p10), %v608_v11  ;;  %v614_v17 = vpack.c.bf16 (!%p202_p10), %v341_v16, %v340_v15  ;;  %v617_v20 = vpack.c.bf16 (!%p202_p10), %v343_v19, %v342_v18  ;;  %v344_v21 = vld [vmem:[%s992_s3 + $0x40] sm:$0xff] (!%p202_p10)  ;;  %v345_v22 = vld [vmem:[%s992_s3 + $0x48] sm:$0xff] (!%p202_p10)  ;;  %v346_v24 = vld [vmem:[%s992_s3 + $0x50] sm:$0xff] (!%p202_p10)  ;;  %s227_s14 = scalar_lea.vmem (!%p202_p10), [#allocation3], %s524_s10 }
  0x13   : > { %610 = vmatprep.subr.bf16.mxu1 (!%p202_p10), %v773_v3  ;;  %v620_v23 = vpack.c.bf16 (!%p202_p10), %v345_v22, %v344_v21  ;;  %v347_v25 = vld [vmem:[%s992_s3 + $0x58] sm:$0xff] (!%p202_p10)  ;;  %v348_v27 = vld [vmem:[%s992_s3 + $0x60] sm:$0xff] (!%p202_p10)  ;;  %v349_v28 = vld [vmem:[%s992_s3 + $0x68] sm:$0xff] (!%p202_p10) }
  0x14   : > { %v623_v26 = vpack.c.bf16 (!%p202_p10), %v347_v25, %v346_v24  ;;  %v626_v29 = vpack.c.bf16 (!%p202_p10), %v349_v28, %v348_v27  ;;  %v350_v30 = vld [vmem:[%s992_s3 + $0x70] sm:$0xff] (!%p202_p10)  ;;  %v351_v31 = vld [vmem:[%s992_s3 + $0x78] sm:$0xff] (!%p202_p10)  ;;  %v526_v33 = vld [vmem:[%s991_s2] ss:$0 sm:$0xff] (!%p202_p10) }
  0x15   : > { %606 = vmatpush3.bf16.msra.mxu0 (!%p202_p10), %v605_v7  ;;  %v629_v32 = vpack.c.bf16 (!%p202_p10), %v351_v31, %v350_v30  ;;  %v528_v52 = vld [vmem:[%s993_s4] ss:$0 sm:$0xff] (!%p202_p10) }
  0x16   : > { %s229_s15 = scalar_select %p228_p11, %s763_s21, 1  ;;  %612 = vmatpush3.bf16.msra.mxu1 %v611_v14 }
  0x17   : > { %613 = vmatprep.subr.bf16.mxu1 %v773_v3  ;;  %v352_v48 = vld [vmem:[#allocation2] sm:$0xff]  ;;  %s776_s21 = smov [#allocation3]  }
  0x18   : > { %s525_s16 = sshll.u32 %s229_s15, 3  ;;  %s452_s15 = sshll.u32 %s227_s14, 4  ;;  %s943_s15 = int_to_ptr.vmem [resolvable:$true] %s452_s15 }
  0x19   : > { %s231_s25 = scalar_lea.vmem %s989_s0, %s525_s16  ;;  %s693_s27 = scalar_lea.vmem %s943_s15, 128 }
  0x1a   : > { %v238_v8 = vld [vmem:[%s231_s25] sm:$0xff]  ;;  %615 = vmatpush3.bf16.msra.mxu1 %v614_v17  ;;  %s439_s25 = scalar_lea.sflag [#allocation4], %s225_s9  ;;  %p694_p12 = scmp.ne.s32.totalorder %s943_s15, %s693_s27 }
  0x1b   : > { %564 = vmatmul.mubr.msk.f32.vlgmr.msra.gmra.mrb[0].mxu0 %vm236_vm1, %v238_v8  ;;  %616 = vmatprep.subr.bf16.mxu1 %v773_v3  ;;  %s697_s29 = sshll.u32 %s776_s21, 4  ;;  %s698_s29 = int_to_ptr.vmem [resolvable:$false] %s697_s29 }
  0x1c   : > { %p695_p13 = pnand %p694_p12, %p847_p4  ;;  %s699_s7 = scalar_lea.vmem %s698_s29, 256 }
  0x1d   : > { %p700_p1 = scmp.lt.s32.totalorder %s943_s15, %s698_s29  ;;  %p701_p2 = scmp.lt.s32.totalorder %s699_s7, %s693_s27 }
  0x1e   : > { %618 = vmatpush3.bf16.msra.mxu1 %v617_v20  ;;  %p696_p0 = pneg %p695_p13 }
  0x1f   : > { %619 = vmatprep.subr.bf16.mxu1 %v773_v3  ;;  %p702_p3 = por %p701_p2, %p700_p1 }
  0x21   : > { %p703_p5 = pnand %p702_p3, %p696_p0 }
  0x22   : > { %621 = vmatpush3.bf16.msra.mxu1 %v620_v23 }
  0x23   : > { %622 = vmatprep.subr.bf16.mxu1 %v773_v3 }
  0x26   : > { %624 = vmatpush3.bf16.msra.mxu1 %v623_v26 }
  0x27   : > { %625 = vmatprep.subr.bf16.mxu1 %v773_v3 }
  0x2a   : > { %627 = vmatpush3.bf16.msra.mxu1 %v626_v29 }
  0x2b   : > { %628 = vmatprep.subr.bf16.mxu1 %v773_v3 }
  0x2e   : > { %630 = vmatpush3.bf16.msra.mxu1 %v629_v32 }
  0xee   : > { %v320_v34 = vpop.f32.mrb[0].mxu0 }
  0xef   : > { %v321_v35 = vadd.f32 %v526_v33, %v320_v34  ;;  %v565_v36 = vpop.f32.mrb[1].mxu0 }
  0xf1   : > { %v324_v37 = vmul.f32 %v321_v35, %v321_v35 }
  0xf3   : > { %v325_v38 = vmul.f32 %v324_v37, %v321_v35 }
  0xf5   : > { %v326_v39 = vmul.f32 0.044715, %v325_v38 }
  0xf7   : > { %v327_v40 = vadd.f32 %v326_v39, %v321_v35 }
  0xf9   : > { %v328_v41 = vmul.f32 1.5957692, %v327_v40 }
  0xfb   : > { %v329_v42 = vsub.f32 0.0, %v328_v41 }
  0xfd   : > { %v330_v43 = vmul.f32 1.442695, %v329_v42 }
  0xff   : > { %689 = vpow2.f32 %v330_v43 }
 0x109   : > { %v690_v44 = vpop.eup %689 }
 0x10a   : > { %v332_v45 = vadd.f32 1.0, %v690_v44 }
 0x10c   : > { %691 = vrcp.f32 %v332_v45 }
 0x116   : > { %v692_v46 = vpop.eup %691 }
 0x117   : > { %v335_v47 = vmul.f32 %v692_v46, %v321_v35 }
 0x119   : > { %599 = vmatmul.mubr.f32.vlgmr.msra.gmra.mrb[0].mxu1 %v335_v47 }
 0x1ec   : > { %v419_v49 = vpop.f32.mrb[0].mxu1 }
 0x1ed   : > { %v423_v50 = vadd.f32 %v419_v49, %v352_v48  ;;  %v600_v51 = vpop.f32.mrb[1].mxu1 }
 0x1ef   : > { %424 = vst.msk [vmem:[#allocation2] sm:$0xff] %vm236_vm1, %v423_v50 }
 0x1f6   : > { %v428_v53 = vld [vmem:[#allocation2] sm:$0xff] }
 0x1f7   : > { %v436_v54 = vadd.f32 %v528_v52, %v428_v53 }
 0x1f9   : > { %437 = vst.msk [vmem:[%s227_s14] sm:$0xff] %vm236_vm1, %v436_v54 }
 0x1fa   : > { %706 = shalt.err (!%p703_p5)
}
 0x1fb   : > { %s707_s8 = scalar_lea.hbm %s941_s24, 128  ;;  %s711_s11 = scalar_lea.hbm %s994_s5, 256 }
 0x1fc   : > { %p708_p6 = scmp.ne.s32.totalorder %s941_s24, %s707_s8  ;;  %p712_p10 = scmp.lt.u32.totalorder %s941_s24, %s994_s5 }
 0x1fd   : > { %p713_p11 = scmp.lt.u32.totalorder %s711_s11, %s707_s8  ;;  %p715_p13 = scmp.lt.u32.totalorder %s707_s8, %s941_s24 }
 0x1fe   : > { %p709_p7 = pnand %p708_p6, %p847_p4 }
 0x1ff   : > { %p714_p12 = por %p713_p11, %p712_p10 }
 0x200   : > { %p710_p9 = pneg %p709_p7 }
 0x201   : > { %p716_p0 = por %p715_p13, %p714_p12 }
 0x203   : > { %p717_p1 = pnand %p716_p0, %p710_p9 }
 0x205   : > { %720 = shalt.err (!%p717_p1)
}
 0x206   : > { %631 = dma.vmem_to_hbm [thread:$0]  (%p847_p4), %s943_s15, 128, %s941_s24, %s439_s25  }
 0x207 PF: > { %p637_p2 = scmp.ge.s32.totalorder %s771_s23, 2  ;;  %s464_s14 = sand.u32 1, %s751_s18  }
 0x208   : > { %s465_s16 = scalar_lea.sflag [#allocation4], %s464_s14 }
 0x209   : > { %p634_p3 = pnand %p637_p2, %p854_p8 }
 0x20b   : > { %746 = dma.done.wait (!%p634_p3), %s465_s16, 128  }
 0x20c   : > { %748 = vsyncadd (!%p634_p3), %s465_s16, 4294967168  ;;  %s18_s23 = sadd.s32 1, %s771_s23   ;;  %s997_s18 = smov %s755_s19 }
 0x20d   : > { %p15_p5 = scmp.ge.s32.totalorder %s18_s23, 4   ;;  %s998_s19 = smov %s759_s20 }
 0x20e   : > { %s999_s20 = smov %s860_s6  ;;  %s1000_s21 = smov %s767_s22 }
 0x20f   : > { %s1001_s22 = smov %s1003_s26  ;;  %17 = sbr.rel (!%p15_p5) target bundleno = 4 (0x4), region = 83 }
 0x216   :  { %470 = vsyncpa [#allocation4], 1 }
 0x217   :  { %472 = vsyncpa [#allocation4 + $0x1], 1 }

</bundles_post_ra>
